<compile_context>
chip_gen: v7x
topology: tpu7x:2x2x1
jax: 0.10.0
libtpu: 0.0.40
codegen_flags: <defaults>
</compile_context>

<pallas_src>
import jax
import jax.numpy as jnp
from jax.experimental import pallas as pl
from jax.experimental.pallas import tpu as pltpu


def _round_up(x, m):
    return ((x + m - 1) // m) * m


def _pick_tile_k(f_pad, cap):
    """Largest multiple of 128 that divides f_pad and is <= cap (>= 128)."""
    n = f_pad // 128
    best = 1
    for d in range(1, n + 1):
        if n % d == 0 and d * 128 <= cap:
            best = d
    return best * 128


def _vmem_limit_bytes():
    """Generation-specific scoped-VMEM limit: ~3/4 of physical, capped at 96 MiB."""
    cap = 64 << 20
    try:
        info = pltpu.get_tpu_info()
        cap = int(getattr(info, "vmem_capacity_bytes", cap))
    except Exception:
        pass
    return int(min(cap * 3 // 4, 96 << 20))


# ---------------------------------------------------------------------------
# Kernels
# ---------------------------------------------------------------------------

def _kernel_folded(x_ref, w_ref, bh_ref, o_ref, acc_ref):
    """acc += x_tile @ Wfold_tile; at last F-tile: out = acc + bh'."""
    k = pl.program_id(1)

    @pl.when(k == 0)
    def _init():
        acc_ref[...] = jnp.zeros_like(acc_ref)

    acc_ref[...] += jnp.dot(
        x_ref[...], w_ref[...], preferred_element_type=jnp.float32
    )

    @pl.when(k == pl.num_programs(1) - 1)
    def _finalize():
        o_ref[...] = (acc_ref[...] + bh_ref[...]).astype(o_ref.dtype)


def _kernel_with_head(x_ref, w12_ref, wh_ref, bh_ref, o_ref, acc_ref):
    """acc += x_tile @ W12_tile; at last F-tile: out = acc @ Wh + bh'."""
    k = pl.program_id(1)

    @pl.when(k == 0)
    def _init():
        acc_ref[...] = jnp.zeros_like(acc_ref)

    acc_ref[...] += jnp.dot(
        x_ref[...], w12_ref[...], preferred_element_type=jnp.float32
    )

    @pl.when(k == pl.num_programs(1) - 1)
    def _finalize():
        logits = jnp.dot(
            acc_ref[...], wh_ref[...], preferred_element_type=jnp.float32
        ) + bh_ref[...]
        o_ref[...] = logits.astype(o_ref.dtype)


# ---------------------------------------------------------------------------
# One-time parameter preparation (outside the per-call hot path)
# ---------------------------------------------------------------------------

def prepare_params(params, *, compute_dtype=jnp.bfloat16, max_tile_k=4096):
    feature_dim, in_features = params["enc1_w"].shape
    num_classes = params["head_w"].shape[0]

    # Exact f32 algebra, done once.
    w12 = (params["enc1_w"] + params["enc2_w"]).T.astype(jnp.float32)    # [F, D]
    b12 = (params["enc1_b"] + params["enc2_b"]).astype(jnp.float32)      # [D]
    wh = params["head_w"].T.astype(jnp.float32)                          # [D, K]
    bh_fold = b12 @ wh + params["head_b"].astype(jnp.float32)            # [K]

    d_pad = _round_up(feature_dim, 128)
    k_pad = _round_up(num_classes, 128)
    f_pad = _round_up(in_features, 128)

    # Fold the head weight in too when it shrinks the streamed-weight bytes.
    fold_head = d_pad > k_pad
    out_cols = k_pad if fold_head else d_pad

    w_bytes = jnp.dtype(compute_dtype).itemsize
    # Keep double-buffered streamed-weight tiles <= ~16 MiB.
    cap = max(128, min(max_tile_k, (8 << 20) // (out_cols * w_bytes)))
    tile_k = _pick_tile_k(f_pad, cap)

    if fold_head:
        w_big = w12 @ wh                                                 # [F, K]
        w_p = (jnp.zeros((f_pad, k_pad), jnp.float32)
               .at[:in_features, :num_classes].set(w_big)
               .astype(compute_dtype))
        wh_p = None
    else:
        w_p = (jnp.zeros((f_pad, d_pad), jnp.float32)
               .at[:in_features, :feature_dim].set(w12)
               .astype(compute_dtype))
        wh_p = (jnp.zeros((d_pad, k_pad), jnp.float32)
                .at[:feature_dim, :num_classes].set(wh))                 # small, keep f32

    bh_p = jnp.zeros((1, k_pad), jnp.float32).at[0, :num_classes].set(bh_fold)

    meta = dict(in_features=in_features, feature_dim=feature_dim,
                num_classes=num_classes, f_pad=f_pad, d_pad=d_pad, k_pad=k_pad,
                tile_k=tile_k, fold_head=fold_head, out_cols=out_cols,
                compute_dtype=compute_dtype)
    return dict(w=w_p, wh=wh_p, bh=bh_p, meta=meta)


# ---------------------------------------------------------------------------
# Forward
# ---------------------------------------------------------------------------

def image_classifier_debug_forward(x_nchw, prepared, *, max_tile_b=256):
    """x_nchw: [B, C, H, W].  prepared: output of prepare_params()."""
    meta = prepared["meta"]
    F, Fp = meta["in_features"], meta["f_pad"]
    Dp, Kp, K = meta["d_pad"], meta["k_pad"], meta["num_classes"]
    tk = meta["tile_k"]
    fold_head = meta["fold_head"]
    out_cols = meta["out_cols"]
    cdt = meta["compute_dtype"]
    w_bytes = jnp.dtype(cdt).itemsize

    B = x_nchw.shape[0]
    tile_b = min(_round_up(max(B, 1), 8), max_tile_b)       # fill MXU rows, sublane-aligned
    Bp = _round_up(B, tile_b)

    x_flat = x_nchw.reshape(B, -1).astype(cdt)              # [B, F] compute dtype
    if Bp != B or Fp != F:                                  # pad only when ragged
        x_flat = jnp.pad(x_flat, ((0, Bp - B), (0, Fp - F)))

    n_b = Bp // tile_b
    n_k = Fp // tk

    flops = 2 * Bp * Fp * out_cols + (0 if fold_head else 2 * Bp * Dp * Kp)
    bytes_accessed = (Bp * Fp * w_bytes                       # activations
                      + n_b * Fp * out_cols * w_bytes         # streamed weight, per batch tile
                      + (0 if fold_head else Dp * Kp * 4)     # resident head weight
                      + Kp * 4 + Bp * Kp * 4)                 # bias + output
    cost = pl.CostEstimate(flops=flops, transcendentals=0,
                           bytes_accessed=bytes_accessed)

    x_spec = pl.BlockSpec((tile_b, tk), lambda i, k: (i, k))
    w_spec = pl.BlockSpec((tk, out_cols), lambda i, k: (k, 0))
    bh_spec = pl.BlockSpec((1, Kp), lambda i, k: (0, 0))
    out_spec = pl.BlockSpec((tile_b, Kp), lambda i, k: (i, 0))   # same block across k

    if fold_head:
        kernel = _kernel_folded
        in_specs = [x_spec, w_spec, bh_spec]
        args = (x_flat, prepared["w"], prepared["bh"])
    else:
        kernel = _kernel_with_head
        wh_spec = pl.BlockSpec((Dp, Kp), lambda i, k: (0, 0))
        in_specs = [x_spec, w_spec, wh_spec, bh_spec]
        args = (x_flat, prepared["w"], prepared["wh"], prepared["bh"])

    out = pl.pallas_call(
        kernel,
        out_shape=jax.ShapeDtypeStruct((Bp, Kp), jnp.float32),
        grid_spec=pltpu.PrefetchScalarGridSpec(
            num_scalar_prefetch=0,
            grid=(n_b, n_k),                                  # (parallel, reduction-last)
            in_specs=in_specs,
            out_specs=out_spec,
            scratch_shapes=[pltpu.VMEM((tile_b, out_cols), jnp.float32)],
        ),
        compiler_params=pltpu.CompilerParams(
            dimension_semantics=("parallel", "arbitrary"),
            vmem_limit_bytes=_vmem_limit_bytes(),
        ),
        cost_estimate=cost,
    )(*args)

    return out[:B, :K]


# ---------------------------------------------------------------------------
# Synthetic params + pure-JAX reference
# ---------------------------------------------------------------------------

def make_params(key, in_features, feature_dim, num_classes):
    """Deterministic synthetic parameters (torch nn.Linear layout: (out, in))."""
    k1, k2, k3, k4, k5, k6 = jax.random.split(key, 6)
    s_in = 1.0 / jnp.sqrt(in_features)
    s_d = 1.0 / jnp.sqrt(feature_dim)
    return {
        "enc1_w": jax.random.uniform(k1, (feature_dim, in_features), jnp.float32, -s_in, s_in),
        "enc1_b": jax.random.uniform(k2, (feature_dim,), jnp.float32, -s_in, s_in),
        "enc2_w": jax.random.uniform(k3, (feature_dim, in_features), jnp.float32, -s_in, s_in),
        "enc2_b": jax.random.uniform(k4, (feature_dim,), jnp.float32, -s_in, s_in),
        "head_w": jax.random.uniform(k5, (num_classes, feature_dim), jnp.float32, -s_d, s_d),
        "head_b": jax.random.uniform(k6, (num_classes,), jnp.float32, -s_d, s_d),
    }


def reference_forward(x_nchw, params):
    """Pure-JAX f32 reference of the original (unfolded) two-encoder forward."""
    x = x_nchw.reshape(x_nchw.shape[0], -1)
    f1 = x @ params["enc1_w"].T + params["enc1_b"]
    f2 = x @ params["enc2_w"].T + params["enc2_b"]
    return (f1 + f2) @ params["head_w"].T + params["head_b"]


if __name__ == "__main__":
    # Shapes consistent with the module: batch=2, channels=4, spatial=16.
    B, C, H, W = 2, 4, 16, 16
    num_classes = 8

    key = jax.random.PRNGKey(0)
    kx, kp1, kp2 = jax.random.split(key, 3)
    x = jax.random.normal(kx, (B, C, H, W), jnp.float32)

    # bf16 compute -> validate against the f32 reference with a bf16-appropriate
    # tolerance (the W1+W2 / bias / head folds themselves are exact f32 algebra).
    TOL = dict(atol=5e-2, rtol=5e-2)

    # Path 1: feature_dim small (Dp == Kp) -> separate head matmul in-kernel.
    params1 = make_params(kp1, C * H * W, 32, num_classes)
    prep1 = prepare_params(params1)
    out1 = jax.block_until_ready(image_classifier_debug_forward(x, prep1))
    ref1 = reference_forward(x, params1)
    assert out1.shape == (B, num_classes), out1.shape
    assert jnp.allclose(out1, ref1, **TOL), "mismatch vs reference (unfolded-head path)"

    # Path 2: feature_dim large (Dp > Kp) -> head weight folded into one GEMM.
    params2 = make_params(kp2, C * H * W, 256, num_classes)
    prep2 = prepare_params(params2)
    out2 = jax.block_until_ready(image_classifier_debug_forward(x, prep2))
    ref2 = reference_forward(x, params2)
    assert out2.shape == (B, num_classes), out2.shape
    assert jnp.allclose(out2, ref2, **TOL), "mismatch vs reference (folded-head path)"

    # TODO(synk): train_preprocess / val_preprocess, save/load, freeze_head are
    # host-side utilities with no kernel equivalent; encoders are modelled as
    # Linear layers as in the synthetic setup.
    print("KERNEL_OK")
</pallas_src>

<mosaic_0001>
module attributes {stable_mosaic.version = 11 : i64} {
  func.func @_kernel_with_head(%arg0: i32, %arg1: i32, %arg2: memref<8x1024xbf16, #tpu.memory_space<vmem>>, %arg3: memref<1024x128xbf16, #tpu.memory_space<vmem>>, %arg4: memref<128x128xf32, #tpu.memory_space<vmem>>, %arg5: memref<1x128xf32, #tpu.memory_space<vmem>>, %arg6: memref<8x128xf32, #tpu.memory_space<vmem>>, %arg7: memref<8x128xf32, #tpu.memory_space<vmem>>) attributes {dimension_semantics = [#tpu.dimension_semantics<parallel>, #tpu.dimension_semantics<arbitrary>], iteration_bounds = array<i64: 1, 1>, scalar_prefetch = 0 : i64, scratch_operands = 1 : i64, tpu.core_type = #tpu.core_type<tc>, window_params = [{transform_indices = @transform_0, window_bounds = array<i64: 8, 1024>}, {transform_indices = @transform_1, window_bounds = array<i64: 1024, 128>}, {pipeline_mode = #tpu.pipeline_mode<synchronous>, transform_indices = @transform_2, window_bounds = array<i64: 128, 128>}, {pipeline_mode = #tpu.pipeline_mode<synchronous>, transform_indices = @transform_3, window_bounds = array<i64: 1, 128>}, {transform_indices = @transform_4, window_bounds = array<i64: 8, 128>}]} {
    %c0_i32 = arith.constant 0 : i32
    %0 = arith.cmpi eq, %arg1, %c0_i32 : i32
    %1 = arith.extui %0 : i1 to i32
    %c0_i32_0 = arith.constant 0 : i32
    %2 = arith.cmpi ne, %1, %c0_i32_0 : i32
    scf.if %2 {
      %cst_10 = arith.constant 0.000000e+00 : f32
      %12 = vector.broadcast %cst_10 : f32 to vector<8x128xf32>
      %c0_11 = arith.constant 0 : index
      %c0_12 = arith.constant 0 : index
      %13 = vector.load %arg7[%c0_11, %c0_12] : memref<8x128xf32, #tpu.memory_space<vmem>>, vector<8x128xf32>
      tpu.vector_store %arg7[%c0_11, %c0_12], %12 {strides = array<i32>} : memref<8x128xf32, #tpu.memory_space<vmem>>, vector<8x128xf32>,
    } else {
    }
    %c0 = arith.constant 0 : index
    %c0_1 = arith.constant 0 : index
    %3 = vector.load %arg7[%c0, %c0_1] : memref<8x128xf32, #tpu.memory_space<vmem>>, vector<8x128xf32>
    %c0_2 = arith.constant 0 : index
    %c0_3 = arith.constant 0 : index
    %4 = vector.load %arg2[%c0_2, %c0_3] : memref<8x1024xbf16, #tpu.memory_space<vmem>>, vector<8x1024xbf16>
    %c0_4 = arith.constant 0 : index
    %c0_5 = arith.constant 0 : index
    %5 = vector.load %arg3[%c0_4, %c0_5] : memref<1024x128xbf16, #tpu.memory_space<vmem>>, vector<1024x128xbf16>
    %cst = arith.constant dense<0.000000e+00> : vector<8x128xf32>
    %6 = tpu.matmul %4, %5, %cst {dimension_numbers = #tpu.dot_dimension_numbers<[1], [0], [0], [1], [0, 0, 1, 1], [], []>} : vector<8x1024xbf16>, vector<1024x128xbf16>, vector<8x128xf32> -> vector<8x128xf32>
    %7 = arith.addf %3, %6 : vector<8x128xf32>
    %c0_6 = arith.constant 0 : index
    %c0_7 = arith.constant 0 : index
    %8 = vector.load %arg7[%c0_6, %c0_7] : memref<8x128xf32, #tpu.memory_space<vmem>>, vector<8x128xf32>
    tpu.vector_store %arg7[%c0_6, %c0_7], %7 {strides = array<i32>} : memref<8x128xf32, #tpu.memory_space<vmem>>, vector<8x128xf32>,
    %c0_i32_8 = arith.constant 0 : i32
    %9 = arith.cmpi eq, %arg1, %c0_i32_8 : i32
    %10 = arith.extui %9 : i1 to i32
    %c0_i32_9 = arith.constant 0 : i32
    %11 = arith.cmpi ne, %10, %c0_i32_9 : i32
    scf.if %11 {
      %c0_10 = arith.constant 0 : index
      %c0_11 = arith.constant 0 : index
      %12 = vector.load %arg7[%c0_10, %c0_11] : memref<8x128xf32, #tpu.memory_space<vmem>>, vector<8x128xf32>
      %c0_12 = arith.constant 0 : index
      %c0_13 = arith.constant 0 : index
      %13 = vector.load %arg4[%c0_12, %c0_13] : memref<128x128xf32, #tpu.memory_space<vmem>>, vector<128x128xf32>
      %cst_14 = arith.constant dense<0.000000e+00> : vector<8x128xf32>
      %14 = tpu.matmul %12, %13, %cst_14 {dimension_numbers = #tpu.dot_dimension_numbers<[1], [0], [0], [1], [0, 0, 1, 1], [], []>} : vector<8x128xf32>, vector<128x128xf32>, vector<8x128xf32> -> vector<8x128xf32>
      %c0_15 = arith.constant 0 : index
      %c0_16 = arith.constant 0 : index
      %15 = vector.load %arg5[%c0_15, %c0_16] : memref<1x128xf32, #tpu.memory_space<vmem>>, vector<1x128xf32>
      %16 = vector.broadcast %15 : vector<1x128xf32> to vector<8x128xf32>
      %17 = arith.addf %14, %16 : vector<8x128xf32>
      %c0_17 = arith.constant 0 : index
      %c0_18 = arith.constant 0 : index
      %18 = vector.load %arg6[%c0_17, %c0_18] : memref<8x128xf32, #tpu.memory_space<vmem>>, vector<8x128xf32>
      tpu.vector_store %arg6[%c0_17, %c0_18], %17 {strides = array<i32>} : memref<8x128xf32, #tpu.memory_space<vmem>>, vector<8x128xf32>,
    } else {
    }
    return
  }
  func.func @transform_0(%arg0: i32, %arg1: i32) -> (i32, i32) {
    %c0_i32 = arith.constant 0 : i32
    return %arg0, %arg1 : i32, i32
  }
  func.func @transform_1(%arg0: i32, %arg1: i32) -> (i32, i32) {
    %c0_i32 = arith.constant 0 : i32
    %c0_i32_0 = arith.constant 0 : i32
    return %arg1, %c0_i32 : i32, i32
  }
  func.func @transform_2(%arg0: i32, %arg1: i32) -> (i32, i32) {
    %c0_i32 = arith.constant 0 : i32
    %c0_i32_0 = arith.constant 0 : i32
    %c0_i32_1 = arith.constant 0 : i32
    return %c0_i32, %c0_i32_0 : i32, i32
  }
  func.func @transform_3(%arg0: i32, %arg1: i32) -> (i32, i32) {
    %c0_i32 = arith.constant 0 : i32
    %c0_i32_0 = arith.constant 0 : i32
    %c0_i32_1 = arith.constant 0 : i32
    return %c0_i32, %c0_i32_0 : i32, i32
  }
  func.func @transform_4(%arg0: i32, %arg1: i32) -> (i32, i32) {
    %c0_i32 = arith.constant 0 : i32
    %c0_i32_0 = arith.constant 0 : i32
    return %arg0, %c0_i32 : i32, i32
  }
}

</mosaic_0001>

<bundles_post_ra>
// kernel: tpu_custom_call.1
= control target key start
LH: loop header
LB: loop body
LE: loop exit
PB: predicated region body
PF: predicated region fallthrough
CT: control target
= control target key end

     0   :  { %9 = vsyncpa [#allocation4], 0  ;;  %s1385_s0 = inlined_call_operand.hbm [shape: bf16[8,1024], index: 0, kind: input, shape index: {}]   ;;  %s1386_s1 = inlined_call_operand.hbm [shape: bf16[1024,128], index: 1, kind: input, shape index: {}]   ;;  %s1387_s2 = inlined_call_operand.hbm [shape: f32[128,128], index: 2, kind: input, shape index: {}]   ;;  %s1388_s3 = inlined_call_operand.vmem [shape: f32[1,128], index: 3, kind: input, shape index: {}]   ;;  %s1389_s4 = inlined_call_operand.hbm [shape: f32[8,128], index: 4, kind: output, shape index: {}]  }
   0x1   :  { %10 = vsyncpa [#allocation7], 0 }
   0x2   :  { %11 = vsyncpa [#allocation5], 0  ;;  %s1298_s15 = smov [#allocation6]   ;;  %s1204_s19 = scalar_lea.hbm %s1386_s1, 8192 }
   0x3   :  { %s27_s16 = sshll.u32 %s1298_s15, 4  ;;  %p1205_p0 = scmp.ne.s32.totalorder %s1386_s1, %s1204_s19  ;;  %s28_s16 = int_to_ptr.vmem [resolvable:$true] %s27_s16 }
   0x4   :  { %p1208_p1 = scmp.lt.u32.totalorder %s1204_s19, %s1386_s1 }
   0x6   :  { %p1210_p2 = pnand %p1208_p1, %p1205_p0 }
   0x8   :  { %1213 = shalt.err (!%p1210_p2)
}
   0x9   :  { %s1214_s24 = scalar_lea.vmem %s28_s16, 8192  ;;  %p1219_p4 = scmp.lt.s32.totalorder %s28_s16, %s28_s16 }
   0xa   :  { %p1215_p3 = scmp.ne.s32.totalorder %s28_s16, %s1214_s24  ;;  %p1220_p5 = scmp.lt.s32.totalorder %s1214_s24, %s1214_s24 }
   0xc   :  { %p1221_p6 = por %p1220_p5, %p1219_p4 }
   0xe   :  { %p1222_p7 = pnand %p1221_p6, %p1215_p3 }
  0x10   :  { %1225 = shalt.err (!%p1222_p7)
}
  0x11   :  { %s1299_s25 = smov 64   ;;  %s1300_s26 = smov 4  }
  0x12   :  { %33 = dma.hbm_to_vmem [thread:$0]  %s1386_s1, 8192, %s28_s16, [#allocation7], %s1299_s25, %s1299_s25, %s1300_s26  }
  0x13   :  { %s1301_s29 = smov [#allocation3]   ;;  %s1302_s5 = smov [#allocation8]  }
  0x14   :  { %s18_s30 = sshll.u32 %s1301_s29, 4  ;;  %s39_s6 = sshll.u32 %s1302_s5, 4  ;;  %s19_s30 = int_to_ptr.vmem [resolvable:$true] %s18_s30  ;;  %s40_s6 = int_to_ptr.vmem [resolvable:$true] %s39_s6 }
  0x15   :  { %s1226_s9 = scalar_lea.hbm %s1385_s0, 512 }
  0x16   :  { %p1227_p8 = scmp.ne.s32.totalorder %s1385_s0, %s1226_s9  ;;  %p1230_p9 = scmp.lt.u32.totalorder %s1226_s9, %s1385_s0 }
  0x18   :  { %p1232_p10 = pnand %p1230_p9, %p1227_p8 }
  0x1a   :  { %1235 = shalt.err (!%p1232_p10)
}
  0x1b   :  { %s1236_s1 = scalar_lea.vmem %s19_s30, 512  ;;  %p1241_p12 = scmp.lt.s32.totalorder %s19_s30, %s19_s30 }
  0x1c   :  { %p1237_p11 = scmp.ne.s32.totalorder %s19_s30, %s1236_s1  ;;  %p1242_p13 = scmp.lt.s32.totalorder %s1236_s1, %s1236_s1 }
  0x1e   :  { %p1243_p0 = por %p1242_p13, %p1241_p12 }
  0x20   :  { %p1244_p1 = pnand %p1243_p0, %p1237_p11 }
  0x22   :  { %1247 = shalt.err (!%p1244_p1)
}
  0x23   :  { %21 = dma.hbm_to_vmem [thread:$0]  %s1385_s0, 512, %s19_s30, [#allocation4]  }
  0x24   :  { %s1248_s18 = scalar_lea.hbm %s1387_s2, 2048 }
  0x25   :  { %p1249_p2 = scmp.ne.s32.totalorder %s1387_s2, %s1248_s18  ;;  %p1252_p3 = scmp.lt.u32.totalorder %s1248_s18, %s1387_s2 }
  0x27   :  { %p1254_p4 = pnand %p1252_p3, %p1249_p2 }
  0x29   :  { %1257 = shalt.err (!%p1254_p4)
}
  0x2a   :  { %s1258_s23 = scalar_lea.vmem %s40_s6, 2048  ;;  %p1263_p6 = scmp.lt.s32.totalorder %s40_s6, %s40_s6 }
  0x2b   :  { %p1259_p5 = scmp.ne.s32.totalorder %s40_s6, %s1258_s23  ;;  %p1264_p7 = scmp.lt.s32.totalorder %s1258_s23, %s1258_s23 }
  0x2d   :  { %p1265_p8 = por %p1264_p7, %p1263_p6 }
  0x2f   :  { %p1266_p9 = pnand %p1265_p8, %p1259_p5 }
  0x31   :  { %1269 = shalt.err (!%p1266_p9)
}
  0x32   :  { %s1303_s0 = smov 128   ;;  %s1304_s24 = smov 8  }
  0x33   :  { %45 = dma.hbm_to_vmem [thread:$0]  %s1387_s2, 2048, %s40_s6, [#allocation7], %s1303_s0, %s1303_s0, %s1304_s24  }
  0x34   :  { %1292 = dma.done.wait [#allocation4], 512  }
  0x35   :  { %1293 = vsyncadd [#allocation4], 4294966784 }
  0x36   :  { %1294 = dma.done.wait [#allocation7], 10240  }
  0x37   :  { %1295 = vsyncadd [#allocation7], 4294957056  ;;  %v1132_v0 = vld [vmem:[#allocation6 + $0x40] sm:$0xff]   ;;  %v1136_v4 = vld [vmem:[#allocation6 + $0x48] sm:$0xff]   ;;  %vm1306_vm0 = vmmov 0   ;;  %s1308_s28 = smov [#allocation9]  }
  0x38   :  { %v1133_v1 = vld [vmem:[#allocation6 + $0xc0] sm:$0xff]   ;;  %957 = vmatprep.subr.bf16.mxu0 %v1132_v0  ;;  %v1137_v5 = vld [vmem:[#allocation6 + $0xc8] sm:$0xff]   ;;  %v1140_v8 = vld [vmem:[#allocation6 + $0x50] sm:$0xff]   ;;  %s874_s29 = sshll.u32 %s1308_s28, 4  ;;  %s875_s29 = int_to_ptr.vmem [resolvable:$true] %s874_s29 }
  0x39   :  { %v1134_v2 = vld [vmem:[#allocation6] sm:$0xff]   ;;  %979 = vmatprep.subr.bf16.mxu1 %v1133_v1  ;;  %v1138_v6 = vld [vmem:[#allocation6 + $0x8] sm:$0xff]   ;;  %v1141_v9 = vld [vmem:[#allocation6 + $0xd0] sm:$0xff]   ;;  %s1270_s30 = scalar_lea.vmem %s875_s29, 128  ;;  %p1275_p11 = scmp.lt.s32.totalorder %s875_s29, %s875_s29 }
  0x3a   :  { %v1135_v3 = vld [vmem:[#allocation6 + $0x80] sm:$0xff]   ;;  %958 = vmatpush3.bf16.msra.mxu0 %v1134_v2  ;;  %v1139_v7 = vld [vmem:[#allocation6 + $0x88] sm:$0xff]   ;;  %v1142_v10 = vld [vmem:[#allocation6 + $0x10] sm:$0xff]   ;;  %p1271_p10 = scmp.ne.s32.totalorder %s875_s29, %s1270_s30  ;;  %p1276_p12 = scmp.lt.s32.totalorder %s1270_s30, %s1270_s30 }
  0x3b   :  { %980 = vmatpush3.bf16.msra.mxu1 %v1135_v3  ;;  %959 = vmatprep.subr.bf16.mxu0 %v1136_v4  ;;  %v1143_v11 = vld [vmem:[#allocation6 + $0x90] sm:$0xff]   ;;  %v1144_v12 = vld [vmem:[#allocation6 + $0x58] sm:$0xff]   ;;  %v1148_v16 = vld [vmem:[#allocation6 + $0x60] sm:$0xff]  }
  0x3c   :  { %981 = vmatprep.subr.bf16.mxu1 %v1137_v5  ;;  %v1145_v13 = vld [vmem:[#allocation6 + $0xd8] sm:$0xff]   ;;  %v1149_v17 = vld [vmem:[#allocation6 + $0xe0] sm:$0xff]   ;;  %v1152_v20 = vld [vmem:[#allocation6 + $0x68] sm:$0xff]   ;;  %p1277_p13 = por %p1276_p12, %p1275_p11 }
  0x3d   :  { %v1146_v14 = vld [vmem:[#allocation6 + $0x18] sm:$0xff]   ;;  %v1150_v18 = vld [vmem:[#allocation6 + $0x20] sm:$0xff]   ;;  %v1153_v21 = vld [vmem:[#allocation6 + $0xe8] sm:$0xff]  }
  0x3e   :  { %960 = vmatpush3.bf16.msra.mxu0 %v1138_v6  ;;  %v1147_v15 = vld [vmem:[#allocation6 + $0x98] sm:$0xff]   ;;  %v1151_v19 = vld [vmem:[#allocation6 + $0xa0] sm:$0xff]   ;;  %v1154_v22 = vld [vmem:[#allocation6 + $0x28] sm:$0xff]   ;;  %p1278_p0 = pnand %p1277_p13, %p1271_p10 }
  0x3f   :  { %982 = vmatpush3.bf16.msra.mxu1 %v1139_v7  ;;  %961 = vmatprep.subr.bf16.mxu0 %v1140_v8  ;;  %v1155_v23 = vld [vmem:[#allocation6 + $0xa8] sm:$0xff]   ;;  %v1156_v24 = vld [vmem:[#allocation6 + $0x70] sm:$0xff]   ;;  %v1160_v28 = vld [vmem:[#allocation6 + $0x78] sm:$0xff]  }
  0x40   :  { %983 = vmatprep.subr.bf16.mxu1 %v1141_v9  ;;  %v1157_v25 = vld [vmem:[#allocation6 + $0xf0] sm:$0xff]   ;;  %v1161_v29 = vld [vmem:[#allocation6 + $0xf8] sm:$0xff]   ;;  %v64_v32 = vld [vmem:[#allocation3] sm:$0xff] }
  0x41   :  { %v1158_v26 = vld [vmem:[#allocation6 + $0x30] sm:$0xff]   ;;  %v1162_v30 = vld [vmem:[#allocation6 + $0x38] sm:$0xff]   ;;  %v65_v33 = vld [vmem:[#allocation3 + $0x8] sm:$0xff]  ;;  %v884_v34 = vcombine.low %v64_v32, %v64_v32  ;;  %v885_v35 = vcombine.high %v64_v32, %v64_v32 }
  0x42   :  { %962 = vmatpush3.bf16.msra.mxu0 %v1142_v10  ;;  %v1159_v27 = vld [vmem:[#allocation6 + $0xb0] sm:$0xff]   ;;  %v1163_v31 = vld [vmem:[#allocation6 + $0xb8] sm:$0xff]   ;;  %v886_v36 = vcombine.low %v65_v33, %v65_v33  ;;  %v887_v37 = vcombine.high %v65_v33, %v65_v33  ;;  %v1168_v38 = vld [vmem:[#allocation6 + $0x140] sm:$0xff]  }
  0x43   :  { %984 = vmatpush3.bf16.msra.mxu1 %v1143_v11  ;;  %963 = vmatprep.subr.bf16.mxu0 %v1144_v12  ;;  %v1169_v39 = vld [vmem:[#allocation6 + $0x1c0] sm:$0xff]   ;;  %v1172_v42 = vld [vmem:[#allocation6 + $0x148] sm:$0xff]   ;;  %v1176_v46 = vld [vmem:[#allocation6 + $0x150] sm:$0xff]  }
  0x44   :  { %985 = vmatprep.subr.bf16.mxu1 %v1145_v13  ;;  %640 = vmatprep.mubr.bf16.mxu0 %v885_v35  ;;  %v1170_v40 = vld [vmem:[#allocation6 + $0x100] sm:$0xff]   ;;  %v1173_v43 = vld [vmem:[#allocation6 + $0x1c8] sm:$0xff]   ;;  %v1177_v47 = vld [vmem:[#allocation6 + $0x1d0] sm:$0xff]  }
  0x45   :  { %680 = vmatprep.mubr.bf16.mxu1 %v887_v37  ;;  %v1171_v41 = vld [vmem:[#allocation6 + $0x180] sm:$0xff]   ;;  %v1174_v44 = vld [vmem:[#allocation6 + $0x108] sm:$0xff]   ;;  %v1178_v48 = vld [vmem:[#allocation6 + $0x110] sm:$0xff]   ;;  %v1307_v37 = vmov 0.0  }
  0x46   :  { %964 = vmatpush3.bf16.msra.mxu0 %v1146_v14  ;;  %v1175_v45 = vld [vmem:[#allocation6 + $0x188] sm:$0xff]   ;;  %v1179_v49 = vld [vmem:[#allocation6 + $0x190] sm:$0xff]   ;;  %v1180_v50 = vld [vmem:[#allocation6 + $0x158] sm:$0xff]  }
  0x47   :  { %986 = vmatpush3.bf16.msra.mxu1 %v1147_v15  ;;  %965 = vmatprep.subr.bf16.mxu0 %v1148_v16  ;;  %v1181_v51 = vld [vmem:[#allocation6 + $0x1d8] sm:$0xff]   ;;  %v1184_v54 = vld [vmem:[#allocation6 + $0x160] sm:$0xff]   ;;  %v1188_v58 = vld [vmem:[#allocation6 + $0x168] sm:$0xff]   ;;  %v1305_v15 = vmov 0.0|0.0  }
  0x48   :  { %987 = vmatprep.subr.bf16.mxu1 %v1149_v17  ;;  %v1182_v52 = vld [vmem:[#allocation6 + $0x118] sm:$0xff]   ;;  %v1185_v55 = vld [vmem:[#allocation6 + $0x1e0] sm:$0xff]   ;;  %v1189_v59 = vld [vmem:[#allocation6 + $0x1e8] sm:$0xff]  }
  0x49   :  { %v1183_v53 = vld [vmem:[#allocation6 + $0x198] sm:$0xff]   ;;  %v1186_v56 = vld [vmem:[#allocation6 + $0x120] sm:$0xff]   ;;  %v1190_v60 = vld [vmem:[#allocation6 + $0x128] sm:$0xff]  }
  0x4a   :  { %966 = vmatpush3.bf16.msra.mxu0 %v1150_v18  ;;  %v1187_v57 = vld [vmem:[#allocation6 + $0x1a0] sm:$0xff]   ;;  %v1191_v61 = vld [vmem:[#allocation6 + $0x1a8] sm:$0xff]   ;;  %v1192_v62 = vld [vmem:[#allocation6 + $0x170] sm:$0xff]  }
  0x4b   :  { %988 = vmatpush3.bf16.msra.mxu1 %v1151_v19  ;;  %967 = vmatprep.subr.bf16.mxu0 %v1152_v20  ;;  %v1193_v63 = vld [vmem:[#allocation6 + $0x1f0] sm:$0xff]   ;;  %v1196_v2 = vld [vmem:[#allocation6 + $0x178] sm:$0xff]   ;;  %v774_v12 = vld [vmem:[#allocation8] sm:$0xff] }
  0x4c   :  { %989 = vmatprep.subr.bf16.mxu1 %v1153_v21  ;;  %v1194_v0 = vld [vmem:[#allocation6 + $0x130] sm:$0xff]   ;;  %v1197_v3 = vld [vmem:[#allocation6 + $0x1f8] sm:$0xff]   ;;  %v775_v13 = vld [vmem:[#allocation8 + $0x8] sm:$0xff] }
  0x4d   :  { %v1195_v1 = vld [vmem:[#allocation6 + $0x1b0] sm:$0xff]   ;;  %v1198_v4 = vld [vmem:[#allocation6 + $0x138] sm:$0xff]   ;;  %v1098_v16 = vpack.c.bf16 %v775_v13, %v774_v12  ;;  %v778_v19 = vld [vmem:[#allocation8 + $0x20] sm:$0xff] }
  0x4e   :  { %968 = vmatpush3.bf16.msra.mxu0 %v1154_v22  ;;  %v1199_v5 = vld [vmem:[#allocation6 + $0x1b8] sm:$0xff]   ;;  %v66_v6 = vld [vmem:[#allocation3 + $0x10] sm:$0xff]  ;;  %v779_v20 = vld [vmem:[#allocation8 + $0x28] sm:$0xff] }
  0x4f   :  { %990 = vmatpush3.bf16.msra.mxu1 %v1155_v23  ;;  %969 = vmatprep.subr.bf16.mxu0 %v1156_v24  ;;  %v888_v7 = vcombine.low %v66_v6, %v66_v6  ;;  %v889_v8 = vcombine.high %v66_v6, %v66_v6  ;;  %v67_v9 = vld [vmem:[#allocation3 + $0x18] sm:$0xff]  ;;  %v776_v14 = vld [vmem:[#allocation8 + $0x10] sm:$0xff]  ;;  %v1104_v21 = vpack.c.bf16 %v779_v20, %v778_v19  ;;  %v787_v32 = vld [vmem:[#allocation8 + $0x68] sm:$0xff] }
  0x50   :  { %991 = vmatprep.subr.bf16.mxu1 %v1157_v25  ;;  %v890_v10 = vcombine.low %v67_v9, %v67_v9  ;;  %v891_v11 = vcombine.high %v67_v9, %v67_v9  ;;  %v777_v17 = vld [vmem:[#allocation8 + $0x18] sm:$0xff]  ;;  %v780_v22 = vld [vmem:[#allocation8 + $0x30] sm:$0xff]  ;;  %v782_v25 = vld [vmem:[#allocation8 + $0x40] sm:$0xff] }
  0x51   :  { %v1101_v18 = vpack.c.bf16 %v777_v17, %v776_v14  ;;  %v781_v23 = vld [vmem:[#allocation8 + $0x38] sm:$0xff] }
  0x52   :  { %970 = vmatpush3.bf16.msra.mxu0 %v1158_v26  ;;  %v1107_v24 = vpack.c.bf16 %v781_v23, %v780_v22  ;;  %v783_v26 = vld [vmem:[#allocation8 + $0x48] sm:$0xff]  ;;  %v789_v35 = vld [vmem:[#allocation8 + $0x78] sm:$0xff] }
  0x53   :  { %992 = vmatpush3.bf16.msra.mxu1 %v1159_v27  ;;  %971 = vmatprep.subr.bf16.mxu0 %v1160_v28  ;;  %v1110_v27 = vpack.c.bf16 %v783_v26, %v782_v25  ;;  %v784_v28 = vld [vmem:[#allocation8 + $0x50] sm:$0xff] }
  0x54   :  { %993 = vmatprep.subr.bf16.mxu1 %v1161_v29  ;;  %v785_v29 = vld [vmem:[#allocation8 + $0x58] sm:$0xff] }
  0x56   :  { %972 = vmatpush3.bf16.msra.mxu0 %v1162_v30  ;;  %v1113_v30 = vpack.c.bf16 %v785_v29, %v784_v28 }
  0x57   :  { %994 = vmatpush3.bf16.msra.mxu1 %v1163_v31  ;;  %1001 = vmatprep.subr.bf16.mxu0 %v1168_v38  ;;  %v786_v31 = vld [vmem:[#allocation8 + $0x60] sm:$0xff] }
  0x58   :  { %1023 = vmatprep.subr.bf16.mxu1 %v1169_v39  ;;  %v1116_v33 = vpack.c.bf16 %v787_v32, %v786_v31 }
  0x59   :  { %641 = vmatmul.mubr.bf16.vlgmr.msra.gmra.mrb[0].mxu0 %v884_v34  ;;  %v788_v34 = vld [vmem:[#allocation8 + $0x70] sm:$0xff] }
  0x5a   :  { %681 = vmatmul.mubr.bf16.vlgmr.msra.gmra.mrb[0].mxu1 %v886_v36  ;;  %1002 = vmatpush3.bf16.msra.mxu0 %v1170_v40  ;;  %v1119_v36 = vpack.c.bf16 %v789_v35, %v788_v34 }
  0x5b   :  { %1024 = vmatpush3.bf16.msra.mxu1 %v1171_v41  ;;  %1003 = vmatprep.subr.bf16.mxu0 %v1172_v42 }
  0x5c   :  { %1025 = vmatprep.subr.bf16.mxu1 %v1173_v43  ;;  %720 = vmatprep.mubr.bf16.mxu0 %v889_v8 }
  0x5d   :  { %760 = vmatprep.mubr.bf16.mxu1 %v891_v11 }
  0x5e   :  { %1004 = vmatpush3.bf16.msra.mxu0 %v1174_v44 }
  0x5f   :  { %1026 = vmatpush3.bf16.msra.mxu1 %v1175_v45  ;;  %1005 = vmatprep.subr.bf16.mxu0 %v1176_v46 }
  0x60   :  { %1027 = vmatprep.subr.bf16.mxu1 %v1177_v47 }
  0x62   :  { %1006 = vmatpush3.bf16.msra.mxu0 %v1178_v48 }
  0x63   :  { %1028 = vmatpush3.bf16.msra.mxu1 %v1179_v49  ;;  %1007 = vmatprep.subr.bf16.mxu0 %v1180_v50 }
  0x64   :  { %1029 = vmatprep.subr.bf16.mxu1 %v1181_v51 }
  0x66   :  { %1008 = vmatpush3.bf16.msra.mxu0 %v1182_v52 }
  0x67   :  { %1030 = vmatpush3.bf16.msra.mxu1 %v1183_v53  ;;  %1009 = vmatprep.subr.bf16.mxu0 %v1184_v54 }
  0x68   :  { %1031 = vmatprep.subr.bf16.mxu1 %v1185_v55 }
  0x6a   :  { %1010 = vmatpush3.bf16.msra.mxu0 %v1186_v56 }
  0x6b   :  { %1032 = vmatpush3.bf16.msra.mxu1 %v1187_v57  ;;  %1011 = vmatprep.subr.bf16.mxu0 %v1188_v58 }
  0x6c   :  { %1033 = vmatprep.subr.bf16.mxu1 %v1189_v59 }
  0x6e   :  { %1012 = vmatpush3.bf16.msra.mxu0 %v1190_v60 }
  0x6f   :  { %1034 = vmatpush3.bf16.msra.mxu1 %v1191_v61  ;;  %1013 = vmatprep.subr.bf16.mxu0 %v1192_v62  ;;  %v956_v61 = vld [vmem:[%s1388_s3] ss:$0 sm:$0xff] }
  0x70   :  { %1035 = vmatprep.subr.bf16.mxu1 %v1193_v63 }
  0x72   :  { %1014 = vmatpush3.bf16.msra.mxu0 %v1194_v0 }
  0x73   :  { %1036 = vmatpush3.bf16.msra.mxu1 %v1195_v1  ;;  %1015 = vmatprep.subr.bf16.mxu0 %v1196_v2 }
  0x74   :  { %1037 = vmatprep.subr.bf16.mxu1 %v1197_v3 }
  0x76   :  { %1016 = vmatpush3.bf16.msra.mxu0 %v1198_v4 }
  0x77   :  { %1038 = vmatpush3.bf16.msra.mxu1 %v1199_v5  ;;  %1097 = vmatprep.subr.bf16.mxu0 %v1305_v15 }
  0x79   :  { %721 = vmatmul.mubr.bf16.vlgmr.msra.gmra.mrb[4].mxu0 %v888_v7 }
  0x7a   :  { %761 = vmatmul.mubr.bf16.vlgmr.msra.gmra.mrb[4].mxu1 %v890_v10  ;;  %1099 = vmatpush3.bf16.msra.mxu0 %v1098_v16 }
  0x7b   :  { %1100 = vmatprep.subr.bf16.mxu0 %v1305_v15  ;;  %1094 = vmatprep.mubr.msk.f32.mxu0 %vm1306_vm0, %v1307_v37 }
  0x7e   :  { %1102 = vmatpush3.bf16.msra.mxu0 %v1101_v18 }
  0x7f   :  { %1103 = vmatprep.subr.bf16.mxu0 %v1305_v15 }
  0x82   :  { %1105 = vmatpush3.bf16.msra.mxu0 %v1104_v21 }
  0x83   :  { %1106 = vmatprep.subr.bf16.mxu0 %v1305_v15 }
  0x86   :  { %1108 = vmatpush3.bf16.msra.mxu0 %v1107_v24 }
  0x87   :  { %1109 = vmatprep.subr.bf16.mxu0 %v1305_v15 }
  0x8a   :  { %1111 = vmatpush3.bf16.msra.mxu0 %v1110_v27 }
  0x8b   :  { %1112 = vmatprep.subr.bf16.mxu0 %v1305_v15 }
  0x8e   :  { %1114 = vmatpush3.bf16.msra.mxu0 %v1113_v30 }
  0x8f   :  { %1115 = vmatprep.subr.bf16.mxu0 %v1305_v15 }
  0x92   :  { %1117 = vmatpush3.bf16.msra.mxu0 %v1116_v33 }
  0x93   :  { %1118 = vmatprep.subr.bf16.mxu0 %v1305_v15 }
  0x96   :  { %1120 = vmatpush3.bf16.msra.mxu0 %v1119_v36 }
 0x12c   :  { %v973_v38 = vpop.f32.mrb[0].mxu0 }
 0x12d   :  { %v995_v39 = vpop.f32.mrb[0].mxu1  ;;  %v974_v40 = vpop.f32.mrb[1].mxu0 }
 0x12e   :  { %v996_v41 = vpop.f32.mrb[1].mxu1  ;;  %v975_v42 = vadd.f32 %v974_v40, %v973_v38  ;;  %v976_v44 = vpop.f32.mrb[2].mxu0 }
 0x12f   :  { %v997_v43 = vadd.f32 %v996_v41, %v995_v39  ;;  %v998_v45 = vpop.f32.mrb[2].mxu1  ;;  %v977_v46 = vpop.f32.mrb[3].mxu0 }
 0x130   :  { %v999_v47 = vpop.f32.mrb[3].mxu1 }
 0x131   :  { %v683_v48 = vadd.f32 %v997_v43, %v975_v42 }
 0x14c   :  { %v1017_v49 = vpop.f32.mrb[4].mxu0 }
 0x14d   :  { %v1039_v50 = vpop.f32.mrb[4].mxu1  ;;  %v1018_v51 = vpop.f32.mrb[5].mxu0 }
 0x14e   :  { %v1040_v52 = vpop.f32.mrb[5].mxu1  ;;  %v1019_v53 = vadd.f32 %v1018_v51, %v1017_v49  ;;  %v1020_v55 = vpop.f32.mrb[6].mxu0 }
 0x14f   :  { %v1041_v54 = vadd.f32 %v1040_v52, %v1039_v50  ;;  %v1042_v56 = vpop.f32.mrb[6].mxu1  ;;  %v1021_v57 = vpop.f32.mrb[7].mxu0 }
 0x150   :  { %v1043_v58 = vpop.f32.mrb[7].mxu1  ;;  %v723_v59 = vadd.f32 %v1019_v53, %v683_v48 }
 0x152   :  { %v763_v60 = vadd.f32 %v1041_v54, %v723_v59 }
 0x154   :  { %1095 = vmatmul.mubr.f32.vlgmr.msra.gmra.mrb[8].mxu0 %v763_v60 }
 0x227   :  { %v863_v62 = vpop.f32.mrb[8].mxu0 }
 0x228   :  { %v864_v63 = vadd.f32 %v956_v61, %v863_v62  ;;  %v1096_v0 = vpop.f32.mrb[9].mxu0 }
 0x22a   :  { %867 = vst [vmem:[#allocation9] sm:$0xff] %v864_v63 }
 0x22b   :  { %1281 = shalt.err (!%p1278_p0)
}
 0x22c   :  { %s1282_s7 = scalar_lea.hbm %s1389_s4, 128 }
 0x22d   :  { %p1283_p1 = scmp.ne.s32.totalorder %s1389_s4, %s1282_s7  ;;  %p1286_p2 = scmp.lt.u32.totalorder %s1282_s7, %s1389_s4 }
 0x22f   :  { %p1288_p3 = pnand %p1286_p2, %p1283_p1 }
 0x231   :  { %1291 = shalt.err (!%p1288_p3)
}
 0x232   :  { %877 = dma.vmem_to_hbm [thread:$0]  %s875_s29, 128, %s1389_s4, [#allocation5]  }
 0x233   :  { %1296 = dma.done.wait [#allocation5], 128  }
 0x234   :  { %1297 = vsyncadd [#allocation5], 4294967168 }
 0x235   :  { %881 = vsyncpa [#allocation4], 1 }
 0x236   :  { %882 = vsyncpa [#allocation7], 1 }
 0x237   :  { %883 = vsyncpa [#allocation5], 1 }

</bundles_post_ra>
